<compile_context>
chip_gen: v7x
topology: tpu7x:2x2x1
jax: 0.10.0
libtpu: 0.0.40
codegen_flags: <defaults>
</compile_context>

<pallas_src>
import jax
import jax.numpy as jnp
from jax.experimental import pallas as pl
from jax.experimental.pallas import tpu as pltpu


def _g_kernel(aty_ref, t5_ref, t6_ref, t4_ref, g_ref):
    # Tiny hoisted constants (1, F): bias and its sigmoid, computed once per block.
    t6 = t6_ref[...].astype(jnp.float32)            # (1, F)
    s0 = jax.nn.sigmoid(t6)                          # exact, numerically stable

    # First matmul: (bm, Y) @ (Y, F); bf16 operands, f32 MXU accumulation.
    h = jnp.dot(aty_ref[...], t5_ref[...],
                preferred_element_type=jnp.float32) + t6        # (bm, F) f32
    s = jax.nn.sigmoid(h) - s0                                   # f32 elementwise

    # Second matmul: (bm, F) @ (F, F); cast activations to the weight dtype (bf16)
    # so the MXU runs its fast path, accumulate in f32.
    g = jnp.dot(s.astype(t4_ref.dtype), t4_ref[...],
                preferred_element_type=jnp.float32)
    g_ref[...] = g.astype(g_ref.dtype)


def _choose_block_rows(N):
    """Pick a large row tile (HBM-bound kernel) but keep >=4 grid steps when N allows
    so both v7x TensorCores get work on the 'parallel' axis."""
    bm = 1024
    while bm > 128 and pl.cdiv(N, bm) < 4 and N > 4 * 128:
        bm //= 2
    return max(16, min(bm, N))          # bf16 min sublane tile on v5e is 16


def x_update_sub_channel_g(ATy, x, params, *, block_rows=None,
                           compute_dtype=jnp.bfloat16, out_dtype=jnp.float32):
    """Pallas forward of the PyTorch module. `x` is unused by the forward (parity)."""
    del x
    N, Y = ATy.shape
    F = params["t4"].shape[0]

    bm = _choose_block_rows(N) if block_rows is None else max(16, min(block_rows, N))
    grid = (pl.cdiv(N, bm),)

    in_bytes = jnp.dtype(compute_dtype).itemsize
    out_bytes = jnp.dtype(out_dtype).itemsize

    # Double-buffered streaming tiles (ATy in, g out) + resident weights (Pallas
    # double-buffers them too, even with constant index_maps).
    tile_vmem = (2 * bm * Y * in_bytes
                 + 2 * bm * F * out_bytes
                 + 2 * (Y * F + F * F) * in_bytes
                 + 2 * F * 4)
    vmem_limit = int(min(max(2 * tile_vmem + (4 << 20), 32 << 20), 64 << 20))

    cost = pl.CostEstimate(
        flops=2 * N * F * (Y + F),
        transcendentals=N * F,
        bytes_accessed=(N * Y + Y * F + F * F) * in_bytes + F * 4 + N * F * out_bytes,
    )

    aty = ATy.astype(compute_dtype)
    t5 = params["t5"].astype(compute_dtype)
    t4 = params["t4"].astype(compute_dtype)
    t6 = params["t6"].astype(jnp.float32)      # tiny bias stays f32 (sigmoid in f32)

    return pl.pallas_call(
        _g_kernel,
        out_shape=jax.ShapeDtypeStruct((N, F), out_dtype),
        grid_spec=pltpu.PrefetchScalarGridSpec(
            num_scalar_prefetch=0,
            grid=grid,
            in_specs=[
                pl.BlockSpec((bm, Y), lambda i: (i, 0)),   # ATy row tile (streamed)
                pl.BlockSpec((Y, F), lambda i: (0, 0)),    # t5: VMEM-resident
                pl.BlockSpec((1, F), lambda i: (0, 0)),    # t6: VMEM-resident
                pl.BlockSpec((F, F), lambda i: (0, 0)),    # t4: VMEM-resident
            ],
            out_specs=pl.BlockSpec((bm, F), lambda i: (i, 0)),
        ),
        compiler_params=pltpu.CompilerParams(
            dimension_semantics=("parallel",),   # megacore sharding on v7x
            vmem_limit_bytes=vmem_limit,
        ),
        cost_estimate=cost,
    )(aty, t5, t6, t4)


def init_params(key, x_size, y_size, feat_size):
    """Mirror the PyTorch init: all three parameters ~ randn."""
    del x_size  # x_size is unused by this module's parameters
    k4, k5, k6 = jax.random.split(key, 3)
    return dict(
        t4=jax.random.normal(k4, (feat_size, feat_size), jnp.float32),
        t5=jax.random.normal(k5, (y_size, feat_size), jnp.float32),
        t6=jax.random.normal(k6, (1, feat_size), jnp.float32),
    )


def reference_matched(ATy, params, compute_dtype=jnp.bfloat16):
    """Pure-JAX reference with the same precision recipe as the kernel
    (bf16 matmul operands, f32 accumulation, exact f32 sigmoid)."""
    aty = ATy.astype(compute_dtype)
    t5 = params["t5"].astype(compute_dtype)
    t4 = params["t4"].astype(compute_dtype)
    t6 = params["t6"].astype(jnp.float32)
    h = jnp.dot(aty, t5, preferred_element_type=jnp.float32) + t6
    s = jax.nn.sigmoid(h) - jax.nn.sigmoid(t6)
    return jnp.dot(s.astype(compute_dtype), t4, preferred_element_type=jnp.float32)


def reference_f32(ATy, params):
    """Full-f32 reference mirroring the PyTorch forward exactly."""
    s = jax.nn.sigmoid(ATy @ params["t5"] + params["t6"]) - jax.nn.sigmoid(params["t6"])
    return s @ params["t4"]


if __name__ == "__main__":
    # Small shapes consistent with the module; feat_size lane-dense (128),
    # enough rows that the grid has several steps.
    N_ROWS = 1024     # rows of ATy (and x)
    X_SIZE = 32       # x feature dim (unused by the forward)
    Y_SIZE = 32       # y_size -> contraction dim of ATy @ t5
    FEAT = 128        # feat_size

    key = jax.random.PRNGKey(0)
    k_aty, k_x, k_p = jax.random.split(key, 3)

    ATy = jax.random.normal(k_aty, (N_ROWS, Y_SIZE), jnp.float32)
    x = jax.random.normal(k_x, (N_ROWS, X_SIZE), jnp.float32)
    params = init_params(k_p, X_SIZE, Y_SIZE, FEAT)

    g = x_update_sub_channel_g(ATy, x, params)
    jax.block_until_ready(g)

    # Precision-matched check (same bf16/f32 recipe): tight tolerance.
    g_ref = reference_matched(ATy, params)
    assert jnp.allclose(g, g_ref, atol=1e-3, rtol=1e-3), "g mismatch vs matched-precision reference"

    # Informational: distance to the full-f32 PyTorch-equivalent result
    # (dominated by the intentional bf16 cast of the matmul operands).
    g_f32 = reference_f32(ATy, params)
    max_diff = float(jnp.max(jnp.abs(g - g_f32)))
    print(f"max |g - g_f32| (bf16 inputs vs f32): {max_diff:.4f}")

    print("KERNEL_OK")
</pallas_src>

<mosaic_0001>
module attributes {stable_mosaic.version = 11 : i64} {
  func.func @_g_kernel(%arg0: i32, %arg1: memref<256x32xbf16, #tpu.memory_space<vmem>>, %arg2: memref<32x128xbf16, #tpu.memory_space<vmem>>, %arg3: memref<1x128xf32, #tpu.memory_space<vmem>>, %arg4: memref<128x128xbf16, #tpu.memory_space<vmem>>, %arg5: memref<256x128xf32, #tpu.memory_space<vmem>>) attributes {dimension_semantics = [#tpu.dimension_semantics<parallel>], iteration_bounds = array<i64: 4>, scalar_prefetch = 0 : i64, scratch_operands = 0 : i64, tpu.core_type = #tpu.core_type<tc>, window_params = [{transform_indices = @transform_0, window_bounds = array<i64: 256, 32>}, {pipeline_mode = #tpu.pipeline_mode<synchronous>, transform_indices = @transform_1, window_bounds = array<i64: 32, 128>}, {pipeline_mode = #tpu.pipeline_mode<synchronous>, transform_indices = @transform_2, window_bounds = array<i64: 1, 128>}, {pipeline_mode = #tpu.pipeline_mode<synchronous>, transform_indices = @transform_3, window_bounds = array<i64: 128, 128>}, {transform_indices = @transform_4, window_bounds = array<i64: 256, 128>}]} {
    %c0 = arith.constant 0 : index
    %c0_0 = arith.constant 0 : index
    %0 = vector.load %arg3[%c0, %c0_0] : memref<1x128xf32, #tpu.memory_space<vmem>>, vector<1x128xf32>
    %1 = arith.negf %0 : vector<1x128xf32>
    %2 = math.exp %1 : vector<1x128xf32>
    %cst = arith.constant 1.000000e+00 : f32
    %3 = vector.broadcast %cst : f32 to vector<1x128xf32>
    %4 = arith.addf %3, %2 : vector<1x128xf32>
    %5 = arith.divf %3, %4 : vector<1x128xf32>
    %c0_1 = arith.constant 0 : index
    %c0_2 = arith.constant 0 : index
    %6 = vector.load %arg1[%c0_1, %c0_2] : memref<256x32xbf16, #tpu.memory_space<vmem>>, vector<256x32xbf16>
    %c0_3 = arith.constant 0 : index
    %c0_4 = arith.constant 0 : index
    %7 = vector.load %arg2[%c0_3, %c0_4] : memref<32x128xbf16, #tpu.memory_space<vmem>>, vector<32x128xbf16>
    %cst_5 = arith.constant dense<0.000000e+00> : vector<256x128xf32>
    %8 = tpu.matmul %6, %7, %cst_5 {dimension_numbers = #tpu.dot_dimension_numbers<[1], [0], [0], [1], [0, 0, 1, 1], [], []>} : vector<256x32xbf16>, vector<32x128xbf16>, vector<256x128xf32> -> vector<256x128xf32>
    %9 = vector.broadcast %0 : vector<1x128xf32> to vector<256x128xf32>
    %10 = arith.addf %8, %9 : vector<256x128xf32>
    %11 = arith.negf %10 : vector<256x128xf32>
    %12 = math.exp %11 : vector<256x128xf32>
    %cst_6 = arith.constant 1.000000e+00 : f32
    %13 = vector.broadcast %cst_6 : f32 to vector<256x128xf32>
    %14 = arith.addf %13, %12 : vector<256x128xf32>
    %15 = arith.divf %13, %14 : vector<256x128xf32>
    %16 = vector.broadcast %5 : vector<1x128xf32> to vector<256x128xf32>
    %17 = arith.subf %15, %16 : vector<256x128xf32>
    %18 = arith.truncf %17 : vector<256x128xf32> to vector<256x128xbf16>
    %c0_7 = arith.constant 0 : index
    %c0_8 = arith.constant 0 : index
    %19 = vector.load %arg4[%c0_7, %c0_8] : memref<128x128xbf16, #tpu.memory_space<vmem>>, vector<128x128xbf16>
    %cst_9 = arith.constant dense<0.000000e+00> : vector<256x128xf32>
    %20 = tpu.matmul %18, %19, %cst_9 {dimension_numbers = #tpu.dot_dimension_numbers<[1], [0], [0], [1], [0, 0, 1, 1], [], []>} : vector<256x128xbf16>, vector<128x128xbf16>, vector<256x128xf32> -> vector<256x128xf32>
    %c0_10 = arith.constant 0 : index
    %c0_11 = arith.constant 0 : index
    %21 = vector.load %arg5[%c0_10, %c0_11] : memref<256x128xf32, #tpu.memory_space<vmem>>, vector<256x128xf32>
    tpu.vector_store %arg5[%c0_10, %c0_11], %20 {strides = array<i32>} : memref<256x128xf32, #tpu.memory_space<vmem>>, vector<256x128xf32>,
    return
  }
  func.func @transform_0(%arg0: i32) -> (i32, i32) {
    %c0_i32 = arith.constant 0 : i32
    %c0_i32_0 = arith.constant 0 : i32
    return %arg0, %c0_i32 : i32, i32
  }
  func.func @transform_1(%arg0: i32) -> (i32, i32) {
    %c0_i32 = arith.constant 0 : i32
    %c0_i32_0 = arith.constant 0 : i32
    %c0_i32_1 = arith.constant 0 : i32
    return %c0_i32, %c0_i32_0 : i32, i32
  }
  func.func @transform_2(%arg0: i32) -> (i32, i32) {
    %c0_i32 = arith.constant 0 : i32
    %c0_i32_0 = arith.constant 0 : i32
    %c0_i32_1 = arith.constant 0 : i32
    return %c0_i32, %c0_i32_0 : i32, i32
  }
  func.func @transform_3(%arg0: i32) -> (i32, i32) {
    %c0_i32 = arith.constant 0 : i32
    %c0_i32_0 = arith.constant 0 : i32
    %c0_i32_1 = arith.constant 0 : i32
    return %c0_i32, %c0_i32_0 : i32, i32
  }
  func.func @transform_4(%arg0: i32) -> (i32, i32) {
    %c0_i32 = arith.constant 0 : i32
    %c0_i32_0 = arith.constant 0 : i32
    return %arg0, %c0_i32 : i32, i32
  }
}

</mosaic_0001>

<bundles_post_ra>
// kernel: tpu_custom_call.1
= control target key start
LH: loop header
LB: loop body
LE: loop exit
PB: predicated region body
PF: predicated region fallthrough
CT: control target
= control target key end

     0   :  { %9 = vsyncpa [#allocation3], 0  ;;  %s1934_s0 = inlined_call_operand.vmem [shape: bf16[1024,32], index: 0, kind: input, shape index: {}]   ;;  %s1935_s1 = inlined_call_operand.vmem [shape: bf16[32,128], index: 1, kind: input, shape index: {}]   ;;  %s1936_s2 = inlined_call_operand.vmem [shape: f32[1,128], index: 2, kind: input, shape index: {}]   ;;  %s1937_s3 = inlined_call_operand.vmem [shape: bf16[128,128], index: 3, kind: input, shape index: {}]   ;;  %s1938_s4 = inlined_call_operand.hbm [shape: f32[1024,128], index: 4, kind: output, shape index: {}]  }
   0x1   :  { %11 = vsyncpa [#allocation3 + $0x1], 0  ;;  %s1651_s15 = smov 0   ;;  %s1653_s16 = smov 0  }
   0x2   :  { %s1655_s17 = smov 0   ;;  %s1657_s18 = smov 0  }
   0x3 LB: > { %s1672_s19 = sadd.s32 4294967295, %s1621_s18   ;;  %s1130_s20 = sadd.s32 4294967294, %s1621_s18   ;;  %s1621_s18 = sphi %s1657_s18, %s1944_s18   ;;  %s1617_s17 = sphi %s1655_s17, %s1943_s17   ;;  %s1613_s16 = sphi %s1653_s16, %s1942_s16   ;;  %s1609_s15 = sphi %s1651_s15, %s1941_s15  }
   0x4   : > { %s1676_s21 = sadd.s32 1, %s1621_s18   ;;  %s113_s22 = sadd.s32 1, %s1617_s17 }
   0x5   : > { %s110_s23 = ssub.s32 %s1621_s18, %s1676_s21  ;;  %p123_p0 = scmp.ne.s32.totalorder %s1617_s17, %s1613_s16 }
   0x6   : > { %p111_p1 = scmp.eq.s32.totalorder %s110_s23, 0  ;;  %p124_p2 = scmp.eq.s32.totalorder %s1672_s19, 3 }
   0x7   : > { %p129_p3 = scmp.ne.s32.totalorder %s1613_s16, %s1609_s15  ;;  %p130_p4 = scmp.eq.s32.totalorder %s1130_s20, 3 }
   0x8   : > { %s1687_s24 = scalar_select %p111_p1, %s1617_s17, %s113_s22  }
   0x9   : > { %p1689_p5 = por %p124_p2, %p123_p0  ;;  %p1693_p6 = por %p130_p4, %p129_p3 }
   0xa   : > { %p1133_p7 = scmp.ge.s32.totalorder %s1621_s18, 1  ;;  %p166_p8 = scmp.lt.s32.totalorder %s1621_s18, 5 }
   0xc   : > { %p167_p9 = pnand %p1133_p7, %p166_p8 }
   0xd   : > { %v1401_v0 = vld [vmem:[%s1935_s1] sm:$0xff] (!%p167_p9)   ;;  %s1135_s29 = sshll.u32 (!%p167_p9), %s1672_s19, 5  ;;  %v1402_v1 = vld [vmem:[%s1935_s1 + $0x8] sm:$0xff] (!%p167_p9)   ;;  %vm341_vm0 = vcmask (!%p167_p9), 261120   ;;  %v1421_v20 = vld [vmem:[%s1937_s3 + $0x10] sm:$0xff] (!%p167_p9)   ;;  %v244_v26 = vlaneseq (!%p167_p9)  ;;  %s189_s11 = sand.u32 (!%p167_p9), 1, %s1613_s16  }
   0xe   : > { %170 = sbr.rel (%p167_p9) target bundleno = 563 (0x233), region = 36  ;;  %p193_p10 = scmp.lt.s32.totalorder (!%p167_p9), %s1135_s29, 127  ;;  %1260 = vmatprep.subr.bf16.mxu0 (!%p167_p9), %v1401_v0  ;;  %v1419_v18 = vld [vmem:[%s1937_s3] sm:$0xff] (!%p167_p9)   ;;  %v1420_v19 = vld [vmem:[%s1937_s3 + $0x8] sm:$0xff] (!%p167_p9)   ;;  %v1422_v21 = vld [vmem:[%s1937_s3 + $0x18] sm:$0xff] (!%p167_p9)  }
   0xf   : > { %1261 = vmatpush3.bf16.msra.mxu0 (!%p167_p9), %v1401_v0  ;;  %1344 = vmatprep.subr.bf16.mxu1 (!%p167_p9), %v1419_v18  ;;  %v1423_v22 = vld [vmem:[%s1937_s3 + $0x20] sm:$0xff] (!%p167_p9)   ;;  %v1424_v23 = vld [vmem:[%s1937_s3 + $0x28] sm:$0xff] (!%p167_p9)   ;;  %v1425_v24 = vld [vmem:[%s1937_s3 + $0x30] sm:$0xff] (!%p167_p9)   ;;  %v1767_v27 = vshrl.u32 (!%p167_p9), %v244_v26, 7  ;;  %s1134_s12 = sshll.u32 (!%p167_p9), %s189_s11, 8  ;;  %s1217_s14 = sshll.u32 (!%p167_p9), %s1672_s19, 12 }
  0x10   : > { %1262 = vmatprep.subr.bf16.mxu0 (!%p167_p9), %v1402_v1  ;;  %1352 = vmatpush3.bf16.msra.mxu1 (!%p167_p9), %v1419_v18  ;;  %v1426_v25 = vld [vmem:[%s1937_s3 + $0x38] sm:$0xff] (!%p167_p9)   ;;  %v200_v28 = vld [vmem:[%s1936_s2] sm:$0x1] (!%p167_p9)  ;;  %s1848_s13 = scalar_lea.vmem (!%p167_p9), [#allocation2], %s1134_s12  ;;  %s1884_s27 = scalar_lea.hbm (!%p167_p9), %s1938_s4, %s1217_s14 }
  0x11   : > { %1345 = vmatprep.subr.bf16.mxu1 (!%p167_p9), %v1420_v19  ;;  %v1137_v29 = vmul.f32 (!%p167_p9), -1.442695, %v200_v28  ;;  %v246_v30 = vsub.s32 (!%p167_p9), 0, %v1767_v27  ;;  %s1068_s20 = sshll.u32 (!%p167_p9), %s1848_s13, 4  ;;  %s1893_s19 = scalar_lea.sflag (!%p167_p9), [#allocation3], %s189_s11  ;;  %s1886_s20 = int_to_ptr.vmem [resolvable:$true] %s1068_s20 }
  0x12   : > { %s1559_s28 = scalar_lea.vmem (!%p167_p9), %s1886_s20, 4096 }
  0x13   : > { %1263 = vmatpush3.bf16.msra.mxu0 (!%p167_p9), %v1402_v1  ;;  %1427 = vpow2.f32 (!%p167_p9), %v1137_v29  ;;  %v1775_v31 = vrot.slane (!%p167_p9), %v200_v28, %v246_v30  ;;  %p1560_p11 = scmp.ne.s32.totalorder (!%p167_p9), %s1886_s20, %s1559_s28 }
  0x14   : > { %1296 = vmatprep.subr.bf16.mxu0 (!%p167_p9), %v1419_v18  ;;  %1353 = vmatpush3.bf16.msra.mxu1 (!%p167_p9), %v1420_v19 }
  0x15   : > { %s1946_s29 = smov (!%p193_p10, %s1135_s29), 127  ;;  %1346 = vmatprep.subr.bf16.mxu1 %v1421_v20  ;;  %p1561_p12 = pnand %p1560_p11, %p1689_p5 }
  0x16   : > { %s1136_s6 = sshll.u32 %s1946_s29, 2  ;;  %s1623_s29 = smov [#allocation2]  }
  0x17   : > { %s1709_s9 = scalar_lea.vmem %s1934_s0, %s1136_s6  ;;  %p1562_p13 = pneg %p1561_p12 }
  0x18   : > { %v1403_v2 = vld [vmem:[%s1709_s9] sm:$0xff]   ;;  %v1404_v3 = vld [vmem:[%s1709_s9 + $0x8] sm:$0xff]   ;;  %v1405_v4 = vld [vmem:[%s1709_s9 + $0x10] sm:$0xff]   ;;  %1354 = vmatpush3.bf16.msra.mxu1 %v1421_v20  ;;  %s1563_s30 = sshll.u32 %s1623_s29, 4  ;;  %s1564_s30 = int_to_ptr.vmem [resolvable:$false] %s1563_s30 }
  0x19   : > { %1264 = vmatprep.mubr.msk.bf16.mxu0 %vm341_vm0, %v1403_v2  ;;  %v1406_v5 = vld [vmem:[%s1709_s9 + $0x18] sm:$0xff]   ;;  %v1407_v6 = vld [vmem:[%s1709_s9 + $0x20] sm:$0xff]   ;;  %v1408_v7 = vld [vmem:[%s1709_s9 + $0x28] sm:$0xff]   ;;  %1347 = vmatprep.subr.bf16.mxu1 %v1422_v21  ;;  %s1565_s5 = scalar_lea.vmem %s1564_s30, 8192  ;;  %p1566_p0 = scmp.lt.s32.totalorder %s1886_s20, %s1564_s30 }
  0x1a   : > { %1265 = vmatmul.mubr.msk.bf16.vlgmr.msra.gmra.mrb[0].mxu0 %vm341_vm0, %v1404_v3  ;;  %v1409_v8 = vld [vmem:[%s1709_s9 + $0x30] sm:$0xff]   ;;  %v1410_v9 = vld [vmem:[%s1709_s9 + $0x38] sm:$0xff]   ;;  %v1411_v10 = vld [vmem:[%s1709_s9 + $0x40] sm:$0xff]   ;;  %p1567_p1 = scmp.lt.s32.totalorder %s1565_s5, %s1559_s28 }
  0x1b   : > { %1268 = vmatprep.mubr.msk.bf16.mxu0 %vm341_vm0, %v1405_v4  ;;  %v1412_v11 = vld [vmem:[%s1709_s9 + $0x48] sm:$0xff]   ;;  %v1413_v12 = vld [vmem:[%s1709_s9 + $0x50] sm:$0xff]   ;;  %v1414_v13 = vld [vmem:[%s1709_s9 + $0x58] sm:$0xff]   ;;  %1297 = vmatpush3.bf16.msra.mxu0 %v1419_v18 }
  0x1c   : > { %v1415_v14 = vld [vmem:[%s1709_s9 + $0x60] sm:$0xff]   ;;  %v1416_v15 = vld [vmem:[%s1709_s9 + $0x68] sm:$0xff]   ;;  %v1417_v16 = vld [vmem:[%s1709_s9 + $0x70] sm:$0xff]   ;;  %1298 = vmatprep.subr.bf16.mxu0 %v1420_v19  ;;  %1355 = vmatpush3.bf16.msra.mxu1 %v1422_v21  ;;  %p1568_p2 = por %p1567_p1, %p1566_p0 }
  0x1d   : > { %v1418_v17 = vld [vmem:[%s1709_s9 + $0x78] sm:$0xff]   ;;  %1348 = vmatprep.subr.bf16.mxu1 %v1423_v22  ;;  %v1428_v42 = vpop.eup %1427 }
  0x1e   : > { %v204_v46 = vadd.f32 1.0, %v1428_v42  ;;  %p1569_p3 = pnand %p1568_p2, %p1562_p13 }
  0x1f   : > { %1299 = vmatpush3.bf16.msra.mxu0 %v1420_v19 }
  0x20   : > { %1300 = vmatprep.subr.bf16.mxu0 %v1421_v20  ;;  %1356 = vmatpush3.bf16.msra.mxu1 %v1423_v22 }
  0x21   : > { %1349 = vmatprep.subr.bf16.mxu1 %v1424_v23 }
  0x22   : > { %1269 = vmatmul.mubr.msk.bf16.gmra.mrb[4].mxu0 %vm341_vm0, %v1406_v5 }
  0x23   : > { %1272 = vmatprep.mubr.msk.bf16.mxu0 %vm341_vm0, %v1407_v6  ;;  %1301 = vmatpush3.bf16.msra.mxu0 %v1421_v20 }
  0x24   : > { %1302 = vmatprep.subr.bf16.mxu0 %v1422_v21  ;;  %1357 = vmatpush3.bf16.msra.mxu1 %v1424_v23 }
  0x25   : > { %1350 = vmatprep.subr.bf16.mxu1 %v1425_v24 }
  0x27   : > { %1303 = vmatpush3.bf16.msra.mxu0 %v1422_v21 }
  0x28   : > { %1304 = vmatprep.subr.bf16.mxu0 %v1423_v22  ;;  %1358 = vmatpush3.bf16.msra.mxu1 %v1425_v24 }
  0x29   : > { %1351 = vmatprep.subr.bf16.mxu1 %v1426_v25 }
  0x2a   : > { %1273 = vmatmul.mubr.msk.bf16.gmra.mrb[8].mxu0 %vm341_vm0, %v1408_v7 }
  0x2b   : > { %1276 = vmatprep.mubr.msk.bf16.mxu0 %vm341_vm0, %v1409_v8  ;;  %1305 = vmatpush3.bf16.msra.mxu0 %v1423_v22 }
  0x2c   : > { %1306 = vmatprep.subr.bf16.mxu0 %v1424_v23  ;;  %1359 = vmatpush3.bf16.msra.mxu1 %v1426_v25 }
  0x2f   : > { %1307 = vmatpush3.bf16.msra.mxu0 %v1424_v23 }
  0x30   : > { %1308 = vmatprep.subr.bf16.mxu0 %v1425_v24 }
  0x32   : > { %1277 = vmatmul.mubr.msk.bf16.gmra.mrb[12].mxu0 %vm341_vm0, %v1410_v9 }
  0x33   : > { %1280 = vmatprep.mubr.msk.bf16.mxu0 %vm341_vm0, %v1411_v10  ;;  %1309 = vmatpush3.bf16.msra.mxu0 %v1425_v24 }
  0x34   : > { %1310 = vmatprep.subr.bf16.mxu0 %v1426_v25 }
  0x37   : > { %1311 = vmatpush3.bf16.msra.mxu0 %v1426_v25 }
  0x3a   : > { %1281 = vmatmul.mubr.msk.bf16.gmra.mrb[16].mxu0 %vm341_vm0, %v1412_v11 }
  0x3b   : > { %1284 = vmatprep.mubr.msk.bf16.mxu0 %vm341_vm0, %v1413_v12 }
  0x42   : > { %1285 = vmatmul.mubr.msk.bf16.gmra.mrb[20].mxu0 %vm341_vm0, %v1414_v13 }
  0x43   : > { %1288 = vmatprep.mubr.msk.bf16.mxu0 %vm341_vm0, %v1415_v14 }
  0x4a   : > { %1289 = vmatmul.mubr.msk.bf16.gmra.mrb[24].mxu0 %vm341_vm0, %v1416_v15 }
  0x4b   : > { %1292 = vmatprep.mubr.msk.bf16.mxu0 %vm341_vm0, %v1417_v16 }
  0x52   : > { %1293 = vmatmul.mubr.msk.bf16.gmra.mrb[28].mxu0 %vm341_vm0, %v1418_v17 }
  0xed   : > { %v1266_v32 = vpop.f32.mrb[0].mxu0 }
  0xee   : > { %v433_v33 = vadd.f32 %v1266_v32, %v1775_v31  ;;  %v424_v34 = vpop.f32.mrb[1].mxu0 }
  0xef   : > { %v425_v35 = vadd.f32 %v424_v34, %v1775_v31  ;;  %v1267_v36 = vpop.f32.mrb[2].mxu0 }
  0xf0   : > { %v1174_v37 = vmul.f32 -1.442695, %v433_v33  ;;  %v436_v38 = vadd.f32 %v1267_v36, %v1775_v31  ;;  %v427_v39 = vpop.f32.mrb[3].mxu0 }
  0xf1   : > { %v1172_v40 = vmul.f32 -1.442695, %v425_v35  ;;  %v428_v41 = vadd.f32 %v427_v39, %v1775_v31 }
  0xf2   : > { %1429 = vpow2.f32 %v1174_v37  ;;  %v1175_v43 = vmul.f32 -1.442695, %v436_v38 }
  0xf3   : > { %1431 = vpow2.f32 %v1172_v40  ;;  %v1173_v44 = vmul.f32 -1.442695, %v428_v41 }
  0xf4   : > { %1433 = vpow2.f32 %v1175_v43 }
  0xf5   : > { %1435 = vpow2.f32 %v1173_v44  ;;  %v1270_v45 = vpop.f32.mrb[4].mxu0 }
  0xf6   : > { %v449_v47 = vadd.f32 %v1270_v45, %v1775_v31  ;;  %v440_v48 = vpop.f32.mrb[5].mxu0  ;;  %1437 = vrcp.f32 %v204_v46 }
  0xf7   : > { %v441_v49 = vadd.f32 %v440_v48, %v1775_v31  ;;  %v1271_v50 = vpop.f32.mrb[6].mxu0 }
  0xf8   : > { %v1178_v51 = vmul.f32 -1.442695, %v449_v47  ;;  %v452_v52 = vadd.f32 %v1271_v50, %v1775_v31  ;;  %v443_v53 = vpop.f32.mrb[7].mxu0 }
  0xf9   : > { %v1176_v54 = vmul.f32 -1.442695, %v441_v49  ;;  %v444_v55 = vadd.f32 %v443_v53, %v1775_v31 }
  0xfa   : > { %1439 = vpow2.f32 %v1178_v51  ;;  %v1179_v56 = vmul.f32 -1.442695, %v452_v52 }
  0xfb   : > { %1441 = vpow2.f32 %v1176_v54  ;;  %v1177_v57 = vmul.f32 -1.442695, %v444_v55 }
  0xfc   : > { %v1430_v58 = vpop.eup %1429  ;;  %1443 = vpow2.f32 %v1179_v56 }
  0xfd   : > { %v1432_v59 = vpop.eup %1431  ;;  %v649_v60 = vadd.f32 1.0, %v1430_v58  ;;  %1445 = vpow2.f32 %v1177_v57  ;;  %v1274_v61 = vpop.f32.mrb[8].mxu0 }
  0xfe   : > { %v1434_v62 = vpop.eup %1433  ;;  %v647_v63 = vadd.f32 1.0, %v1432_v59  ;;  %v465_v0 = vadd.f32 %v1274_v61, %v1775_v31  ;;  %v456_v1 = vpop.f32.mrb[9].mxu0 }
  0xff   : > { %v1436_v2 = vpop.eup %1435  ;;  %1447 = vrcp.f32 %v649_v60  ;;  %v650_v3 = vadd.f32 1.0, %v1434_v62  ;;  %v457_v4 = vadd.f32 %v456_v1, %v1775_v31  ;;  %v1275_v5 = vpop.f32.mrb[10].mxu0 }
 0x100   : > { %1449 = vrcp.f32 %v647_v63  ;;  %v648_v6 = vadd.f32 1.0, %v1436_v2  ;;  %v1182_v7 = vmul.f32 -1.442695, %v465_v0  ;;  %v468_v8 = vadd.f32 %v1275_v5, %v1775_v31  ;;  %v459_v9 = vpop.f32.mrb[11].mxu0  ;;  %v1438_v13 = vpop.eup %1437 }
 0x101   : > { %1451 = vrcp.f32 %v650_v3  ;;  %v1180_v10 = vmul.f32 -1.442695, %v457_v4  ;;  %v460_v11 = vadd.f32 %v459_v9, %v1775_v31  ;;  %v1793_v28 = vrot.slane %v1438_v13, %v246_v30 }
 0x102   : > { %1453 = vrcp.f32 %v648_v6  ;;  %v1183_v12 = vmul.f32 -1.442695, %v468_v8 }
 0x103   : > { %1455 = vpow2.f32 %v1182_v7  ;;  %v1181_v14 = vmul.f32 -1.442695, %v460_v11 }
 0x104   : > { %v1440_v15 = vpop.eup %1439  ;;  %1457 = vpow2.f32 %v1180_v10 }
 0x105   : > { %v1442_v16 = vpop.eup %1441  ;;  %v653_v17 = vadd.f32 1.0, %v1440_v15  ;;  %1459 = vpow2.f32 %v1183_v12  ;;  %v1278_v18 = vpop.f32.mrb[12].mxu0 }
 0x106   : > { %v1444_v19 = vpop.eup %1443  ;;  %v651_v20 = vadd.f32 1.0, %v1442_v16  ;;  %1461 = vpow2.f32 %v1181_v14  ;;  %v481_v21 = vadd.f32 %v1278_v18, %v1775_v31  ;;  %v472_v22 = vpop.f32.mrb[13].mxu0 }
 0x107   : > { %v1446_v23 = vpop.eup %1445  ;;  %1463 = vrcp.f32 %v653_v17  ;;  %v654_v24 = vadd.f32 1.0, %v1444_v19  ;;  %v473_v25 = vadd.f32 %v472_v22, %v1775_v31  ;;  %v1279_v26 = vpop.f32.mrb[14].mxu0 }
 0x108   : > { %1465 = vrcp.f32 %v651_v20  ;;  %v652_v29 = vadd.f32 1.0, %v1446_v23  ;;  %v1186_v32 = vmul.f32 -1.442695, %v481_v21  ;;  %v484_v33 = vadd.f32 %v1279_v26, %v1775_v31  ;;  %v475_v34 = vpop.f32.mrb[15].mxu0 }
 0x109   : > { %v1448_v35 = vpop.eup %1447  ;;  %1467 = vrcp.f32 %v654_v24  ;;  %v1184_v36 = vmul.f32 -1.442695, %v473_v25  ;;  %v476_v37 = vadd.f32 %v475_v34, %v1775_v31 }
 0x10a   : > { %v1450_v38 = vpop.eup %1449  ;;  %1469 = vrcp.f32 %v652_v29  ;;  %v1187_v39 = vmul.f32 -1.442695, %v484_v33  ;;  %v751_v30 = vsub.f32 %v1448_v35, %v1793_v28 }
 0x10b   : > { %v1452_v40 = vpop.eup %1451  ;;  %1471 = vpow2.f32 %v1186_v32  ;;  %v1185_v41 = vmul.f32 -1.442695, %v476_v37  ;;  %v749_v45 = vsub.f32 %v1450_v38, %v1793_v28 }
 0x10c   : > { %v1454_v27 = vpop.eup %1453  ;;  %1473 = vpow2.f32 %v1184_v36  ;;  %v752_v42 = vsub.f32 %v1452_v40, %v1793_v28 }
 0x10d   : > { %v1456_v43 = vpop.eup %1455  ;;  %1475 = vpow2.f32 %v1187_v39  ;;  %v1282_v44 = vpop.f32.mrb[16].mxu0  ;;  %v750_v46 = vsub.f32 %v1454_v27, %v1793_v28 }
 0x10e   : > { %v1458_v47 = vpop.eup %1457  ;;  %v657_v48 = vadd.f32 1.0, %v1456_v43  ;;  %1477 = vpow2.f32 %v1185_v41  ;;  %v497_v49 = vadd.f32 %v1282_v44, %v1775_v31  ;;  %v488_v50 = vpop.f32.mrb[17].mxu0  ;;  %v782_v51 = vpack.c.bf16 %v752_v42, %v751_v30 }
 0x10f   : > { %v1460_v52 = vpop.eup %1459  ;;  %v655_v53 = vadd.f32 1.0, %v1458_v47  ;;  %v489_v54 = vadd.f32 %v488_v50, %v1775_v31  ;;  %v1283_v55 = vpop.f32.mrb[18].mxu0  ;;  %v781_v56 = vpack.c.bf16 %v750_v46, %v749_v45 }
 0x110   : > { %v1462_v57 = vpop.eup %1461  ;;  %1479 = vrcp.f32 %v657_v48  ;;  %v658_v58 = vadd.f32 1.0, %v1460_v52  ;;  %v1190_v59 = vmul.f32 -1.442695, %v497_v49  ;;  %v500_v60 = vadd.f32 %v1283_v55, %v1775_v31  ;;  %v491_v61 = vpop.f32.mrb[19].mxu0 }
 0x111   : > { %v1464_v62 = vpop.eup %1463  ;;  %1481 = vrcp.f32 %v655_v53  ;;  %v656_v63 = vadd.f32 1.0, %v1462_v57  ;;  %v1188_v0 = vmul.f32 -1.442695, %v489_v54  ;;  %v492_v1 = vadd.f32 %v491_v61, %v1775_v31  ;;  %1312 = vmatprep.mubr.bf16.mxu0 %v781_v56 }
 0x112   : > { %v1466_v2 = vpop.eup %1465  ;;  %1483 = vrcp.f32 %v658_v58  ;;  %v1191_v3 = vmul.f32 -1.442695, %v500_v60  ;;  %1313 = vmatmul.mubr.bf16.vlgmr.msra.gmra.mrb[32].mxu0 %v782_v51  ;;  %v755_v7 = vsub.f32 %v1464_v62, %v1793_v28 }
 0x113   : > { %v1468_v4 = vpop.eup %1467  ;;  %1485 = vrcp.f32 %v656_v63  ;;  %v1189_v5 = vmul.f32 -1.442695, %v492_v1  ;;  %v753_v11 = vsub.f32 %v1466_v2, %v1793_v28 }
 0x114   : > { %v1470_v6 = vpop.eup %1469  ;;  %1487 = vpow2.f32 %v1190_v59  ;;  %v756_v8 = vsub.f32 %v1468_v4, %v1793_v28 }
 0x115   : > { %v1472_v9 = vpop.eup %1471  ;;  %1489 = vpow2.f32 %v1188_v0  ;;  %v1286_v10 = vpop.f32.mrb[20].mxu0  ;;  %v754_v12 = vsub.f32 %v1470_v6, %v1793_v28 }
 0x116   : > { %v1474_v13 = vpop.eup %1473  ;;  %v661_v14 = vadd.f32 1.0, %v1472_v9  ;;  %1491 = vpow2.f32 %v1191_v3  ;;  %v513_v15 = vadd.f32 %v1286_v10, %v1775_v31  ;;  %v504_v16 = vpop.f32.mrb[21].mxu0  ;;  %v784_v17 = vpack.c.bf16 %v756_v8, %v755_v7 }
 0x117   : > { %v1476_v18 = vpop.eup %1475  ;;  %v659_v19 = vadd.f32 1.0, %v1474_v13  ;;  %1493 = vpow2.f32 %v1189_v5  ;;  %v505_v20 = vadd.f32 %v504_v16, %v1775_v31  ;;  %v1287_v21 = vpop.f32.mrb[22].mxu0  ;;  %v783_v22 = vpack.c.bf16 %v754_v12, %v753_v11 }
 0x118   : > { %v1478_v23 = vpop.eup %1477  ;;  %1495 = vrcp.f32 %v661_v14  ;;  %v662_v24 = vadd.f32 1.0, %v1476_v18  ;;  %v1194_v25 = vmul.f32 -1.442695, %v513_v15  ;;  %v516_v26 = vadd.f32 %v1287_v21, %v1775_v31  ;;  %v507_v29 = vpop.f32.mrb[23].mxu0 }
 0x119   : > { %1497 = vrcp.f32 %v659_v19  ;;  %v660_v32 = vadd.f32 1.0, %v1478_v23  ;;  %v1192_v33 = vmul.f32 -1.442695, %v505_v20  ;;  %v508_v34 = vadd.f32 %v507_v29, %v1775_v31  ;;  %1316 = vmatprep.mubr.bf16.mxu1 %v783_v22 }
 0x11a   : > { %v1480_v35 = vpop.eup %1479  ;;  %1499 = vrcp.f32 %v662_v24  ;;  %v1195_v36 = vmul.f32 -1.442695, %v516_v26  ;;  %1317 = vmatmul.mubr.bf16.vlgmr.msra.gmra.mrb[0].mxu1 %v784_v17 }
 0x11b   : > { %v1482_v37 = vpop.eup %1481  ;;  %1501 = vrcp.f32 %v660_v32  ;;  %v1193_v38 = vmul.f32 -1.442695, %v508_v34  ;;  %v759_v27 = vsub.f32 %v1480_v35, %v1793_v28 }
 0x11c   : > { %v1484_v39 = vpop.eup %1483  ;;  %1503 = vpow2.f32 %v1194_v25  ;;  %v757_v45 = vsub.f32 %v1482_v37, %v1793_v28 }
 0x11d   : > { %v1486_v40 = vpop.eup %1485  ;;  %1505 = vpow2.f32 %v1192_v33  ;;  %v1290_v41 = vpop.f32.mrb[24].mxu0  ;;  %v760_v30 = vsub.f32 %v1484_v39, %v1793_v28 }
 0x11e   : > { %v1488_v42 = vpop.eup %1487  ;;  %1507 = vpow2.f32 %v1195_v36  ;;  %v529_v43 = vadd.f32 %v1290_v41, %v1775_v31  ;;  %v520_v44 = vpop.f32.mrb[25].mxu0  ;;  %v758_v46 = vsub.f32 %v1486_v40, %v1793_v28 }
 0x11f   : > { %v1490_v47 = vpop.eup %1489  ;;  %v665_v48 = vadd.f32 1.0, %v1488_v42  ;;  %1509 = vpow2.f32 %v1193_v38  ;;  %v521_v49 = vadd.f32 %v520_v44, %v1775_v31  ;;  %v1291_v50 = vpop.f32.mrb[26].mxu0  ;;  %v786_v51 = vpack.c.bf16 %v760_v30, %v759_v27 }
 0x120   : > { %v1492_v52 = vpop.eup %1491  ;;  %v663_v53 = vadd.f32 1.0, %v1490_v47  ;;  %v532_v54 = vadd.f32 %v1291_v50, %v1775_v31  ;;  %v523_v55 = vpop.f32.mrb[27].mxu0  ;;  %v785_v56 = vpack.c.bf16 %v758_v46, %v757_v45  ;;  %v1198_v59 = vmul.f32 -1.442695, %v529_v43 }
 0x121   : > { %v1494_v57 = vpop.eup %1493  ;;  %1511 = vrcp.f32 %v665_v48  ;;  %v666_v58 = vadd.f32 1.0, %v1492_v52  ;;  %v524_v60 = vadd.f32 %v523_v55, %v1775_v31  ;;  %v1196_v63 = vmul.f32 -1.442695, %v521_v49 }
 0x122   : > { %v1496_v61 = vpop.eup %1495  ;;  %1513 = vrcp.f32 %v663_v53  ;;  %v664_v62 = vadd.f32 1.0, %v1494_v57  ;;  %1320 = vmatprep.mubr.bf16.mxu1 %v785_v56  ;;  %v1199_v1 = vmul.f32 -1.442695, %v532_v54 }
 0x123   : > { %v1498_v0 = vpop.eup %1497  ;;  %1515 = vrcp.f32 %v666_v58  ;;  %1321 = vmatmul.mubr.bf16.gmra.mrb[4].mxu1 %v786_v51  ;;  %v1197_v3 = vmul.f32 -1.442695, %v524_v60  ;;  %v763_v6 = vsub.f32 %v1496_v61, %v1793_v28 }
 0x124   : > { %v1500_v2 = vpop.eup %1499  ;;  %1517 = vrcp.f32 %v664_v62  ;;  %v761_v21 = vsub.f32 %v1498_v0, %v1793_v28 }
 0x125   : > { %v1502_v4 = vpop.eup %1501  ;;  %1519 = vpow2.f32 %v1198_v59  ;;  %v1294_v5 = vpop.f32.mrb[28].mxu0  ;;  %v764_v7 = vsub.f32 %v1500_v2, %v1793_v28 }
 0x126   : > { %v1504_v8 = vpop.eup %1503  ;;  %1521 = vpow2.f32 %v1196_v63  ;;  %v545_v9 = vadd.f32 %v1294_v5, %v1775_v31  ;;  %v536_v10 = vpop.f32.mrb[29].mxu0  ;;  %v762_v11 = vsub.f32 %v1502_v4, %v1793_v28 }
 0x127   : > { %v1506_v12 = vpop.eup %1505  ;;  %v669_v13 = vadd.f32 1.0, %v1504_v8  ;;  %1523 = vpow2.f32 %v1199_v1  ;;  %v537_v14 = vadd.f32 %v536_v10, %v1775_v31  ;;  %v1295_v15 = vpop.f32.mrb[30].mxu0  ;;  %v788_v16 = vpack.c.bf16 %v764_v7, %v763_v6 }
 0x128   : > { %v1508_v17 = vpop.eup %1507  ;;  %v667_v18 = vadd.f32 1.0, %v1506_v12  ;;  %1525 = vpow2.f32 %v1197_v3  ;;  %v548_v19 = vadd.f32 %v1295_v15, %v1775_v31  ;;  %v539_v20 = vpop.f32.mrb[31].mxu0  ;;  %v1202_v24 = vmul.f32 -1.442695, %v545_v9 }
 0x129   : > { %v1510_v22 = vpop.eup %1509  ;;  %1527 = vrcp.f32 %v669_v13  ;;  %v670_v23 = vadd.f32 1.0, %v1508_v17  ;;  %v540_v25 = vadd.f32 %v539_v20, %v1775_v31  ;;  %v1200_v29 = vmul.f32 -1.442695, %v537_v14 }
 0x12a   : > { %1529 = vrcp.f32 %v667_v18  ;;  %v668_v26 = vadd.f32 1.0, %v1510_v22  ;;  %v787_v32 = vpack.c.bf16 %v762_v11, %v761_v21  ;;  %v1203_v34 = vmul.f32 -1.442695, %v548_v19 }
 0x12b   : > { %v1512_v33 = vpop.eup %1511  ;;  %1531 = vrcp.f32 %v670_v23  ;;  %v1201_v36 = vmul.f32 -1.442695, %v540_v25 }
 0x12c   : > { %v1514_v35 = vpop.eup %1513  ;;  %1533 = vrcp.f32 %v668_v26  ;;  %1324 = vmatprep.mubr.bf16.mxu1 %v787_v32  ;;  %v767_v39 = vsub.f32 %v1512_v33, %v1793_v28 }
 0x12d   : > { %v1516_v37 = vpop.eup %1515  ;;  %1535 = vpow2.f32 %v1202_v24  ;;  %1325 = vmatmul.mubr.bf16.gmra.mrb[8].mxu1 %v788_v16  ;;  %v765_v41 = vsub.f32 %v1514_v35, %v1793_v28 }
 0x12e   : > { %v1518_v38 = vpop.eup %1517  ;;  %1537 = vpow2.f32 %v1200_v29  ;;  %v768_v31 = vsub.f32 %v1516_v37, %v1793_v28 }
 0x12f   : > { %v1520_v40 = vpop.eup %1519  ;;  %1539 = vpow2.f32 %v1203_v34  ;;  %v766_v27 = vsub.f32 %v1518_v38, %v1793_v28 }
 0x130   : > { %v1522_v30 = vpop.eup %1521  ;;  %v673_v42 = vadd.f32 1.0, %v1520_v40  ;;  %1541 = vpow2.f32 %v1201_v36  ;;  %v790_v43 = vpack.c.bf16 %v768_v31, %v767_v39 }
 0x131   : > { %v1524_v44 = vpop.eup %1523  ;;  %v671_v45 = vadd.f32 1.0, %v1522_v30  ;;  %v789_v46 = vpack.c.bf16 %v766_v27, %v765_v41 }
 0x132   : > { %v1526_v47 = vpop.eup %1525  ;;  %1543 = vrcp.f32 %v673_v42  ;;  %v674_v48 = vadd.f32 1.0, %v1524_v44 }
 0x133   : > { %v1528_v49 = vpop.eup %1527  ;;  %1545 = vrcp.f32 %v671_v45  ;;  %v672_v50 = vadd.f32 1.0, %v1526_v47  ;;  %1328 = vmatprep.mubr.bf16.mxu1 %v789_v46 }
 0x134   : > { %v1530_v51 = vpop.eup %1529  ;;  %1547 = vrcp.f32 %v674_v48  ;;  %v771_v54 = vsub.f32 %v1528_v49, %v1793_v28 }
 0x135   : > { %v1532_v52 = vpop.eup %1531  ;;  %1549 = vrcp.f32 %v672_v50  ;;  %1329 = vmatmul.mubr.bf16.gmra.mrb[12].mxu1 %v790_v43  ;;  %v769_v57 = vsub.f32 %v1530_v51, %v1793_v28 }
 0x136   : > { %v1534_v53 = vpop.eup %1533  ;;  %v772_v55 = vsub.f32 %v1532_v52, %v1793_v28 }
 0x137   : > { %v1536_v56 = vpop.eup %1535  ;;  %v770_v58 = vsub.f32 %v1534_v53, %v1793_v28 }
 0x138   : > { %v1538_v59 = vpop.eup %1537  ;;  %v677_v60 = vadd.f32 1.0, %v1536_v56  ;;  %v792_v61 = vpack.c.bf16 %v772_v55, %v771_v54 }
 0x139   : > { %v1540_v62 = vpop.eup %1539  ;;  %v675_v63 = vadd.f32 1.0, %v1538_v59  ;;  %v791_v0 = vpack.c.bf16 %v770_v58, %v769_v57 }
 0x13a   : > { %v1542_v1 = vpop.eup %1541  ;;  %1551 = vrcp.f32 %v677_v60  ;;  %v678_v2 = vadd.f32 1.0, %v1540_v62 }
 0x13b   : > { %1553 = vrcp.f32 %v675_v63  ;;  %v676_v3 = vadd.f32 1.0, %v1542_v1  ;;  %1332 = vmatprep.mubr.bf16.mxu1 %v791_v0 }
 0x13c   : > { %v1544_v4 = vpop.eup %1543  ;;  %1555 = vrcp.f32 %v678_v2 }
 0x13d   : > { %v1546_v5 = vpop.eup %1545  ;;  %1557 = vrcp.f32 %v676_v3  ;;  %1333 = vmatmul.mubr.bf16.gmra.mrb[16].mxu1 %v792_v61  ;;  %v775_v8 = vsub.f32 %v1544_v4, %v1793_v28 }
 0x13e   : > { %v1548_v6 = vpop.eup %1547  ;;  %v773_v10 = vsub.f32 %v1546_v5, %v1793_v28 }
 0x13f   : > { %v1550_v7 = vpop.eup %1549  ;;  %v776_v9 = vsub.f32 %v1548_v6, %v1793_v28 }
 0x140   : > { %v774_v11 = vsub.f32 %v1550_v7, %v1793_v28 }
 0x141   : > { %v794_v12 = vpack.c.bf16 %v776_v9, %v775_v8 }
 0x142   : > { %v793_v13 = vpack.c.bf16 %v774_v11, %v773_v10 }
 0x144   : > { %v1552_v14 = vpop.eup %1551  ;;  %1336 = vmatprep.mubr.bf16.mxu1 %v793_v13 }
 0x145   : > { %v1554_v15 = vpop.eup %1553  ;;  %1337 = vmatmul.mubr.bf16.gmra.mrb[20].mxu1 %v794_v12  ;;  %v779_v18 = vsub.f32 %v1552_v14, %v1793_v28 }
 0x146   : > { %v1556_v16 = vpop.eup %1555  ;;  %v777_v20 = vsub.f32 %v1554_v15, %v1793_v28 }
 0x147   : > { %v1558_v17 = vpop.eup %1557  ;;  %v780_v19 = vsub.f32 %v1556_v16, %v1793_v28 }
 0x148   : > { %v778_v21 = vsub.f32 %v1558_v17, %v1793_v28 }
 0x149   : > { %v796_v22 = vpack.c.bf16 %v780_v19, %v779_v18 }
 0x14a   : > { %v795_v23 = vpack.c.bf16 %v778_v21, %v777_v20 }
 0x14c   : > { %1340 = vmatprep.mubr.bf16.mxu1 %v795_v23 }
 0x14d   : > { %1341 = vmatmul.mubr.bf16.gmra.mrb[24].mxu1 %v796_v22 }
 0x1e5   : > { %v1314_v24 = vpop.f32.mrb[32].mxu0 }
 0x1e6   : > { %1024 = vst [vmem:[%s1848_s13 + $0x10] sm:$0xff] %v1314_v24  ;;  %v895_v28 = vpop.f32.mrb[33].mxu0 }
 0x1e7   : > { %1022 = vst [vmem:[%s1848_s13] sm:$0xff] %v895_v28  ;;  %v1315_v25 = vpop.f32.mrb[34].mxu0 }
 0x1e8   : > { %1025 = vst [vmem:[%s1848_s13 + $0x18] sm:$0xff] %v1315_v25  ;;  %v898_v26 = vpop.f32.mrb[35].mxu0 }
 0x1e9   : > { %1023 = vst [vmem:[%s1848_s13 + $0x8] sm:$0xff] %v898_v26 }
 0x1ed   : > { %v1318_v29 = vpop.f32.mrb[0].mxu1 }
 0x1ee   : > { %1028 = vst [vmem:[%s1848_s13 + $0x30] sm:$0xff] %v1318_v29  ;;  %v911_v32 = vpop.f32.mrb[1].mxu1 }
 0x1ef   : > { %1026 = vst [vmem:[%s1848_s13 + $0x20] sm:$0xff] %v911_v32  ;;  %v1319_v33 = vpop.f32.mrb[2].mxu1 }
 0x1f0   : > { %1029 = vst [vmem:[%s1848_s13 + $0x38] sm:$0xff] %v1319_v33  ;;  %v914_v34 = vpop.f32.mrb[3].mxu1 }
 0x1f1   : > { %1027 = vst [vmem:[%s1848_s13 + $0x28] sm:$0xff] %v914_v34 }
 0x1f6   : > { %v1322_v35 = vpop.f32.mrb[4].mxu1 }
 0x1f7   : > { %1032 = vst [vmem:[%s1848_s13 + $0x50] sm:$0xff] %v1322_v35  ;;  %v927_v36 = vpop.f32.mrb[5].mxu1 }
 0x1f8   : > { %1030 = vst [vmem:[%s1848_s13 + $0x40] sm:$0xff] %v927_v36  ;;  %v1323_v37 = vpop.f32.mrb[6].mxu1 }
 0x1f9   : > { %1033 = vst [vmem:[%s1848_s13 + $0x58] sm:$0xff] %v1323_v37  ;;  %v930_v38 = vpop.f32.mrb[7].mxu1 }
 0x1fa   : > { %1031 = vst [vmem:[%s1848_s13 + $0x48] sm:$0xff] %v930_v38 }
 0x200   : > { %v1326_v39 = vpop.f32.mrb[8].mxu1 }
 0x201   : > { %1036 = vst [vmem:[%s1848_s13 + $0x70] sm:$0xff] %v1326_v39  ;;  %v943_v31 = vpop.f32.mrb[9].mxu1 }
 0x202   : > { %1034 = vst [vmem:[%s1848_s13 + $0x60] sm:$0xff] %v943_v31  ;;  %v1327_v40 = vpop.f32.mrb[10].mxu1 }
 0x203   : > { %1037 = vst [vmem:[%s1848_s13 + $0x78] sm:$0xff] %v1327_v40  ;;  %v946_v41 = vpop.f32.mrb[11].mxu1 }
 0x204   : > { %1035 = vst [vmem:[%s1848_s13 + $0x68] sm:$0xff] %v946_v41 }
 0x208   : > { %v1330_v27 = vpop.f32.mrb[12].mxu1 }
 0x209   : > { %1040 = vst [vmem:[%s1848_s13 + $0x90] sm:$0xff] %v1330_v27  ;;  %v959_v30 = vpop.f32.mrb[13].mxu1 }
 0x20a   : > { %1038 = vst [vmem:[%s1848_s13 + $0x80] sm:$0xff] %v959_v30  ;;  %v1331_v42 = vpop.f32.mrb[14].mxu1 }
 0x20b   : > { %1041 = vst [vmem:[%s1848_s13 + $0x98] sm:$0xff] %v1331_v42  ;;  %v962_v43 = vpop.f32.mrb[15].mxu1 }
 0x20c   : > { %1039 = vst [vmem:[%s1848_s13 + $0x88] sm:$0xff] %v962_v43 }
 0x210   : > { %v1334_v44 = vpop.f32.mrb[16].mxu1 }
 0x211   : > { %1044 = vst [vmem:[%s1848_s13 + $0xb0] sm:$0xff] %v1334_v44  ;;  %v975_v45 = vpop.f32.mrb[17].mxu1 }
 0x212   : > { %1042 = vst [vmem:[%s1848_s13 + $0xa0] sm:$0xff] %v975_v45  ;;  %v1335_v46 = vpop.f32.mrb[18].mxu1 }
 0x213   : > { %1045 = vst [vmem:[%s1848_s13 + $0xb8] sm:$0xff] %v1335_v46  ;;  %v978_v47 = vpop.f32.mrb[19].mxu1 }
 0x214   : > { %1043 = vst [vmem:[%s1848_s13 + $0xa8] sm:$0xff] %v978_v47 }
 0x218   : > { %v1338_v48 = vpop.f32.mrb[20].mxu1 }
 0x219   : > { %1048 = vst [vmem:[%s1848_s13 + $0xd0] sm:$0xff] %v1338_v48  ;;  %v991_v49 = vpop.f32.mrb[21].mxu1 }
 0x21a   : > { %1046 = vst [vmem:[%s1848_s13 + $0xc0] sm:$0xff] %v991_v49  ;;  %v1339_v50 = vpop.f32.mrb[22].mxu1 }
 0x21b   : > { %1049 = vst [vmem:[%s1848_s13 + $0xd8] sm:$0xff] %v1339_v50  ;;  %v994_v51 = vpop.f32.mrb[23].mxu1 }
 0x21c   : > { %1047 = vst [vmem:[%s1848_s13 + $0xc8] sm:$0xff] %v994_v51 }
 0x220   : > { %v1342_v52 = vpop.f32.mrb[24].mxu1 }
 0x221   : > { %1052 = vst [vmem:[%s1848_s13 + $0xf0] sm:$0xff] %v1342_v52  ;;  %v1007_v53 = vpop.f32.mrb[25].mxu1 }
 0x222   : > { %1050 = vst [vmem:[%s1848_s13 + $0xe0] sm:$0xff] %v1007_v53  ;;  %v1343_v54 = vpop.f32.mrb[26].mxu1 }
 0x223   : > { %1053 = vst [vmem:[%s1848_s13 + $0xf8] sm:$0xff] %v1343_v54  ;;  %v1010_v55 = vpop.f32.mrb[27].mxu1 }
 0x224   : > { %1051 = vst [vmem:[%s1848_s13 + $0xe8] sm:$0xff] %v1010_v55 }
 0x225   : > { %1572 = shalt.err (!%p1569_p3)
}
 0x226   : > { %s1573_s6 = scalar_lea.hbm %s1884_s27, 4096  ;;  %s1577_s9 = scalar_lea.hbm %s1938_s4, 16384 }
 0x227   : > { %p1574_p4 = scmp.ne.s32.totalorder %s1884_s27, %s1573_s6  ;;  %p1578_p9 = scmp.lt.u32.totalorder %s1884_s27, %s1938_s4 }
 0x228   : > { %p1579_p10 = scmp.lt.u32.totalorder %s1577_s9, %s1573_s6  ;;  %p1581_p12 = scmp.lt.u32.totalorder %s1573_s6, %s1884_s27 }
 0x229   : > { %p1575_p7 = pnand %p1574_p4, %p1689_p5 }
 0x22a   : > { %p1580_p11 = por %p1579_p10, %p1578_p9 }
 0x22b   : > { %p1576_p8 = pneg %p1575_p7 }
 0x22c   : > { %p1582_p13 = por %p1581_p12, %p1580_p11 }
 0x22e   : > { %p1583_p0 = pnand %p1582_p13, %p1576_p8 }
 0x230   : > { %1586 = shalt.err (!%p1583_p0)
}
 0x231   : > { %s1624_s12 = smov 128   ;;  %s1625_s13 = smov 8  }
 0x232   : > { %1360 = dma.vmem_to_hbm [thread:$0]  (%p1689_p5), %s1886_s20, 4096, %s1884_s27, %s1893_s19, %s1624_s12, %s1624_s12, %s1625_s13  }
 0x233 PF: > { %p1366_p1 = scmp.ge.s32.totalorder %s1621_s18, 2  ;;  %s1083_s14 = sand.u32 1, %s1609_s15  }
 0x234   : > { %s1084_s22 = scalar_lea.sflag [#allocation3], %s1083_s14 }
 0x235   : > { %p1363_p2 = pnand %p1366_p1, %p1693_p6 }
 0x237   : > { %1604 = dma.done.wait (!%p1363_p2), %s1084_s22, 4096  }
 0x238   : > { %1606 = vsyncadd (!%p1363_p2), %s1084_s22, 4294963200  ;;  %p14_p3 = scmp.ge.s32.totalorder %s1676_s21, 6   ;;  %s1941_s15 = smov %s1613_s16 }
 0x239   : > { %s1942_s16 = smov %s1617_s17  ;;  %s1943_s17 = smov %s1687_s24 }
 0x23a   : > { %s1944_s18 = smov %s1676_s21  ;;  %16 = sbr.rel (!%p14_p3) target bundleno = 3 (0x3), region = 71 }
 0x241   :  { %1089 = vsyncpa [#allocation3], 1 }
 0x242   :  { %1091 = vsyncpa [#allocation3 + $0x1], 1 }

</bundles_post_ra>
